<compile_context>
chip_gen: v5e
topology: v5e:2x2
jax: 0.10.0
libtpu: 0.0.40
codegen_flags: <defaults>
</compile_context>

<pallas_src>
import functools

import jax
import jax.numpy as jnp
from jax import lax
from jax.experimental import pallas as pl
from jax.experimental.pallas import tpu as pltpu


def _round_up(x, m):
    return (x + m - 1) // m * m


# ----------------------------------------------------------------------------
# Pallas kernel: whole encoder hot path for one batch element.
#   xp_ref : (1, cin_p, n_x)   zero-padded image, channels on sublanes,
#                              flattened padded spatial (ph*Wp + pw) on lanes
#   w1_ref : (c1, kk*cin_p)    conv1 weights, columns ordered (tap, channel)
#   b1_ref : (c1, 1)           conv1 bias
#   w2_ref : (c2, c1)          1x1 conv2 weights with BN1 affine folded in
#   b2_ref : (c2, 1)           conv2 bias with BN1 shift folded in
#   s2_ref : (c2, 1)           scale * BN2 scale
#   t2_ref : (c2, 1)           scale * BN2 shift
#   o_ref  : (1, c2, n_out)    softmax output in padded spatial coordinates
# ----------------------------------------------------------------------------
def _encoder_kernel(xp_ref, w1_ref, b1_ref, w2_ref, b2_ref, s2_ref, t2_ref,
                    o_ref, *, offsets, n_out):
    x = xp_ref[0]                                           # (cin_p, n_x)

    # In-VMEM im2col: each conv tap is a static lane-shifted slice of the
    # (once-loaded) padded image.  Concatenate along the sublane axis to get
    # one (kk*cin_p, n_out) slab -> a single big-K MXU matmul for conv1.
    slab = jnp.concatenate([x[:, off:off + n_out] for off in offsets], axis=0)

    # Conv1 ('same', stride 1): (c1, kk*cin_p) @ (kk*cin_p, n_out)
    a = jnp.dot(w1_ref[...], slab, preferred_element_type=jnp.float32)
    a = a + b1_ref[...]
    a = jnp.maximum(a, 0.02 * a)                            # LeakyReLU(0.02)
    # BN1 (eval) folded into w2/b2; Dropout2d(0.2) is identity in eval mode.

    # Conv2 (1x1): (c2, c1) @ (c1, n_out)
    h = jnp.dot(w2_ref[...], a, preferred_element_type=jnp.float32)
    h = h + b2_ref[...]
    h = jnp.maximum(h, 0.02 * h)                            # LeakyReLU(0.02)
    # Dropout2d(0.2): identity in eval mode.

    # BN2 (eval) + SumToOne scale pre-fused: z = scale*(h*bn2_s + bn2_t)
    z = h * s2_ref[...] + t2_ref[...]

    # softmax over the channel (sublane) axis
    z = z - jnp.max(z, axis=0, keepdims=True)
    e = jnp.exp(z)
    s = jnp.sum(e, axis=0, keepdims=True)
    inv = pl.reciprocal(s, approx=True)                     # EUP reciprocal
    inv = inv * (2.0 - s * inv)                             # one Newton step
    o_ref[0] = (e * inv).astype(o_ref.dtype)


# ----------------------------------------------------------------------------
# Parameter initialization (deterministic, shapes per Encoder.__init__).
# ----------------------------------------------------------------------------
def init_encoder_params(key, n_bands, e_filters, num_endmembers, e_size,
                        scale):
    k1, k2, k3, k4 = jax.random.split(key, 4)
    # nn.init.normal_(weight, mean=0.0, std=0.03)
    w1 = 0.03 * jax.random.normal(
        k1, (e_filters, n_bands, e_size, e_size), jnp.float32)   # OIHW
    w2 = 0.03 * jax.random.normal(
        k2, (num_endmembers, e_filters, 1, 1), jnp.float32)      # OIHW
    # Conv2d default bias init: U(-1/sqrt(fan_in), 1/sqrt(fan_in))
    bound1 = 1.0 / jnp.sqrt(jnp.float32(n_bands * e_size * e_size))
    bound2 = 1.0 / jnp.sqrt(jnp.float32(e_filters))
    b1 = jax.random.uniform(k3, (e_filters,), jnp.float32, -bound1, bound1)
    b2 = jax.random.uniform(k4, (num_endmembers,), jnp.float32, -bound2,
                            bound2)
    eps = 1e-5
    # BatchNorm2d fresh state: gamma=1, beta=0, running_mean=0, running_var=1
    bn1_scale = jnp.ones((e_filters,), jnp.float32) / jnp.sqrt(1.0 + eps)
    bn1_shift = jnp.zeros((e_filters,), jnp.float32)
    bn2_scale = jnp.ones((num_endmembers,), jnp.float32) / jnp.sqrt(1.0 + eps)
    bn2_shift = jnp.zeros((num_endmembers,), jnp.float32)
    return dict(w1=w1, b1=b1, w2=w2, b2=b2,
                bn1_scale=bn1_scale, bn1_shift=bn1_shift,
                bn2_scale=bn2_scale, bn2_shift=bn2_shift,
                e_size=e_size, scale=scale)


# ----------------------------------------------------------------------------
# One-time parameter fusion (kept OFF the per-call hot path).
# ----------------------------------------------------------------------------
def fuse_encoder_params(params):
    k = int(params["e_size"])
    kk = k * k
    c1, cin = params["w1"].shape[0], params["w1"].shape[1]
    c2 = params["w2"].shape[0]
    cin_p = _round_up(cin, 8)                 # sublane-aligned channel count

    # conv1 weights OIHW -> (c1, kk*cin_p); column order = (tap, channel)
    w1t = jnp.transpose(params["w1"], (0, 2, 3, 1))          # (c1, k, k, cin)
    w1t = jnp.pad(w1t, ((0, 0), (0, 0), (0, 0), (0, cin_p - cin)))
    w1t = w1t.reshape(c1, kk * cin_p)

    # conv2 (1x1) weights with BN1 eval-mode affine folded in:
    #   W2 @ (s1*a + t1) + b2 == (W2*s1) @ a + (W2 @ t1 + b2)
    w2m = params["w2"][:, :, 0, 0]                           # (c2, c1)
    w2f = w2m * params["bn1_scale"][None, :]
    b2f = params["b2"] + w2m @ params["bn1_shift"]

    # BN2 eval affine with the SumToOne softmax scale folded in.
    scale = float(params["scale"])
    s2c = (scale * params["bn2_scale"]).reshape(c2, 1)
    t2c = (scale * params["bn2_shift"]).reshape(c2, 1)

    return dict(w1t=w1t, b1c=params["b1"].reshape(c1, 1), w2f=w2f,
                b2c=b2f.reshape(c2, 1), s2c=s2c, t2c=t2c, e_size=k)


# ----------------------------------------------------------------------------
# Jitted forward: NCHW in -> Pallas kernel -> NCHW out.
# ----------------------------------------------------------------------------
@functools.partial(jax.jit, static_argnames=("e_size",))
def _encoder_apply(x_nchw, w1t, b1c, w2f, b2c, s2c, t2c, *, e_size):
    B, cin, H, W = x_nchw.shape
    k = e_size
    # 'same' padding with symmetric pads only reproduces PyTorch for odd k.
    assert k % 2 == 1, "encoder_forward supports odd e_size only"
    pad = (k - 1) // 2
    kk = k * k
    c1 = w1t.shape[0]
    c2 = w2f.shape[0]
    cin_p = w1t.shape[1] // kk

    Hp, Wp = H + 2 * pad, W + 2 * pad
    hpwp = Hp * Wp
    max_off = (k - 1) * Wp + (k - 1)
    n_out = _round_up(hpwp, 128)              # lane-dense compute width
    n_x = _round_up(n_out + max_off, 128)     # input width incl. tap halo

    # --- glue: input layout (fused into this jit, negligible cost) ----------
    xpad = jnp.pad(x_nchw.astype(jnp.float32),
                   ((0, 0), (0, 0), (pad, pad), (pad, pad)))
    xflat = xpad.reshape(B, cin, hpwp)
    xps = jnp.pad(xflat, ((0, 0), (0, cin_p - cin), (0, n_x - hpwp)))

    # Static lane offsets of the k*k conv taps in flattened padded coords.
    offsets = tuple(kh * Wp + kw for kh in range(k) for kw in range(k))
    kernel = functools.partial(_encoder_kernel, offsets=offsets, n_out=n_out)

    out_flat = pl.pallas_call(
        kernel,
        out_shape=jax.ShapeDtypeStruct((B, c2, n_out), jnp.float32),
        grid=(B,),
        in_specs=[
            pl.BlockSpec((1, cin_p, n_x), lambda b: (b, 0, 0)),
            pl.BlockSpec((c1, kk * cin_p), lambda b: (0, 0)),
            pl.BlockSpec((c1, 1), lambda b: (0, 0)),
            pl.BlockSpec((c2, c1), lambda b: (0, 0)),
            pl.BlockSpec((c2, 1), lambda b: (0, 0)),
            pl.BlockSpec((c2, 1), lambda b: (0, 0)),
            pl.BlockSpec((c2, 1), lambda b: (0, 0)),
        ],
        out_specs=pl.BlockSpec((1, c2, n_out), lambda b: (b, 0, 0)),
        compiler_params=pltpu.CompilerParams(
            dimension_semantics=("parallel",),
            vmem_limit_bytes=32 * 1024 * 1024),
    )(xps, w1t, b1c, w2f, b2c, s2c, t2c)

    # Drop padded-coordinate columns -> NCHW output (channel axis already 2nd).
    out = out_flat[:, :, :hpwp].reshape(B, c2, Hp, Wp)[:, :, :H, :W]
    return out


def encoder_forward(x_nchw, fused):
    return _encoder_apply(x_nchw, fused["w1t"], fused["b1c"], fused["w2f"],
                          fused["b2c"], fused["s2c"], fused["t2c"],
                          e_size=fused["e_size"])


# ----------------------------------------------------------------------------
# Pure-JAX reference (for correctness check) — unfused eval-mode forward.
# ----------------------------------------------------------------------------
def encoder_reference(x_nchw, params):
    x = jnp.transpose(x_nchw, (0, 2, 3, 1)).astype(jnp.float32)   # NHWC
    dn = ("NHWC", "HWIO", "NHWC")
    w1 = jnp.transpose(params["w1"], (2, 3, 1, 0))                # HWIO
    w2 = jnp.transpose(params["w2"], (2, 3, 1, 0))
    y = lax.conv_general_dilated(x, w1, (1, 1), "SAME",
                                 dimension_numbers=dn) + params["b1"]
    y = jnp.where(y >= 0, y, 0.02 * y)
    y = y * params["bn1_scale"] + params["bn1_shift"]
    y = lax.conv_general_dilated(y, w2, (1, 1), "SAME",
                                 dimension_numbers=dn) + params["b2"]
    y = jnp.where(y >= 0, y, 0.02 * y)
    y = y * params["bn2_scale"] + params["bn2_shift"]
    y = jax.nn.softmax(params["scale"] * y, axis=-1)
    return jnp.transpose(y, (0, 3, 1, 2))


if __name__ == "__main__":
    # Small shapes consistent with the module:
    #   params.n_bands=4, params.e_filters=32, params.num_endmembers=8,
    #   params.e_size=3, params.scale=3.0 ; input NCHW = (2, 4, 16, 16)
    B, n_bands, H, W = 2, 4, 16, 16
    e_filters, num_endmembers, e_size, scale = 32, 8, 3, 3.0

    key = jax.random.PRNGKey(0)
    k_in, k_par = jax.random.split(key)
    x = jax.random.normal(k_in, (B, n_bands, H, W), jnp.float32)

    params = init_encoder_params(k_par, n_bands, e_filters, num_endmembers,
                                 e_size, scale)
    fused = fuse_encoder_params(params)

    out = encoder_forward(x, fused)
    out = jax.block_until_ready(out)

    ref = encoder_reference(x, params)
    assert out.shape == (B, num_endmembers, H, W)
    # abundances sum to one over the endmember (channel) axis
    assert jnp.allclose(jnp.sum(out, axis=1), 1.0, atol=1e-4)
    assert jnp.allclose(out, ref, atol=1e-4, rtol=1e-4), \
        f"max abs diff {jnp.max(jnp.abs(out - ref))}"

    print("KERNEL_OK")
</pallas_src>

<mosaic_0001>
module attributes {stable_mosaic.version = 11 : i64} {
  func.func @_encoder_kernel(%arg0: i32, %arg1: memref<1x8x512xf32, #tpu.memory_space<vmem>>, %arg2: memref<32x72xf32, #tpu.memory_space<vmem>>, %arg3: memref<32x1xf32, #tpu.memory_space<vmem>>, %arg4: memref<8x32xf32, #tpu.memory_space<vmem>>, %arg5: memref<8x1xf32, #tpu.memory_space<vmem>>, %arg6: memref<8x1xf32, #tpu.memory_space<vmem>>, %arg7: memref<8x1xf32, #tpu.memory_space<vmem>>, %arg8: memref<1x8x384xf32, #tpu.memory_space<vmem>>) attributes {dimension_semantics = [#tpu.dimension_semantics<parallel>], iteration_bounds = array<i64: 2>, scalar_prefetch = 0 : i64, scratch_operands = 0 : i64, tpu.core_type = #tpu.core_type<tc>, window_params = [{transform_indices = @transform_0, window_bounds = array<i64: 1, 8, 512>}, {pipeline_mode = #tpu.pipeline_mode<synchronous>, transform_indices = @transform_1, window_bounds = array<i64: 32, 72>}, {pipeline_mode = #tpu.pipeline_mode<synchronous>, transform_indices = @transform_2, window_bounds = array<i64: 32, 1>}, {pipeline_mode = #tpu.pipeline_mode<synchronous>, transform_indices = @transform_3, window_bounds = array<i64: 8, 32>}, {pipeline_mode = #tpu.pipeline_mode<synchronous>, transform_indices = @transform_4, window_bounds = array<i64: 8, 1>}, {pipeline_mode = #tpu.pipeline_mode<synchronous>, transform_indices = @transform_5, window_bounds = array<i64: 8, 1>}, {pipeline_mode = #tpu.pipeline_mode<synchronous>, transform_indices = @transform_6, window_bounds = array<i64: 8, 1>}, {transform_indices = @transform_7, window_bounds = array<i64: 1, 8, 384>}]} {
    %c0 = arith.constant 0 : index
    %c0_0 = arith.constant 0 : index
    %c0_1 = arith.constant 0 : index
    %0 = vector.load %arg1[%c0, %c0_0, %c0_1] : memref<1x8x512xf32, #tpu.memory_space<vmem>>, vector<1x8x512xf32>
    %1 = vector.shape_cast %0 : vector<1x8x512xf32> to vector<8x512xf32>
    %2 = vector.extract_strided_slice %1 {offsets = [0, 0], sizes = [8, 384], strides = [1, 1]} : vector<8x512xf32> to vector<8x384xf32>
    %3 = vector.extract_strided_slice %1 {offsets = [0, 1], sizes = [8, 384], strides = [1, 1]} : vector<8x512xf32> to vector<8x384xf32>
    %4 = vector.extract_strided_slice %1 {offsets = [0, 2], sizes = [8, 384], strides = [1, 1]} : vector<8x512xf32> to vector<8x384xf32>
    %5 = vector.extract_strided_slice %1 {offsets = [0, 18], sizes = [8, 384], strides = [1, 1]} : vector<8x512xf32> to vector<8x384xf32>
    %6 = vector.extract_strided_slice %1 {offsets = [0, 19], sizes = [8, 384], strides = [1, 1]} : vector<8x512xf32> to vector<8x384xf32>
    %7 = vector.extract_strided_slice %1 {offsets = [0, 20], sizes = [8, 384], strides = [1, 1]} : vector<8x512xf32> to vector<8x384xf32>
    %8 = vector.extract_strided_slice %1 {offsets = [0, 36], sizes = [8, 384], strides = [1, 1]} : vector<8x512xf32> to vector<8x384xf32>
    %9 = vector.extract_strided_slice %1 {offsets = [0, 37], sizes = [8, 384], strides = [1, 1]} : vector<8x512xf32> to vector<8x384xf32>
    %10 = vector.extract_strided_slice %1 {offsets = [0, 38], sizes = [8, 384], strides = [1, 1]} : vector<8x512xf32> to vector<8x384xf32>
    %11 = tpu.concatenate %2, %3, %4, %5, %6, %7, %8, %9, %10 in 0 : vector<8x384xf32>, vector<8x384xf32>, vector<8x384xf32>, vector<8x384xf32>, vector<8x384xf32>, vector<8x384xf32>, vector<8x384xf32>, vector<8x384xf32>, vector<8x384xf32> -> vector<72x384xf32>
    %c0_2 = arith.constant 0 : index
    %c0_3 = arith.constant 0 : index
    %12 = vector.load %arg2[%c0_2, %c0_3] : memref<32x72xf32, #tpu.memory_space<vmem>>, vector<32x72xf32>
    %cst = arith.constant dense<0.000000e+00> : vector<32x384xf32>
    %13 = tpu.matmul %12, %11, %cst {dimension_numbers = #tpu.dot_dimension_numbers<[1], [0], [0], [1], [0, 0, 1, 1], [], []>} : vector<32x72xf32>, vector<72x384xf32>, vector<32x384xf32> -> vector<32x384xf32>
    %c0_4 = arith.constant 0 : index
    %c0_5 = arith.constant 0 : index
    %14 = vector.load %arg3[%c0_4, %c0_5] : memref<32x1xf32, #tpu.memory_space<vmem>>, vector<32x1xf32>
    %15 = vector.broadcast %14 : vector<32x1xf32> to vector<32x384xf32>
    %16 = arith.addf %13, %15 : vector<32x384xf32>
    %cst_6 = arith.constant 2.000000e-02 : f32
    %17 = vector.broadcast %cst_6 : f32 to vector<32x384xf32>
    %18 = arith.mulf %17, %16 : vector<32x384xf32>
    %19 = arith.maximumf %16, %18 : vector<32x384xf32>
    %c0_7 = arith.constant 0 : index
    %c0_8 = arith.constant 0 : index
    %20 = vector.load %arg4[%c0_7, %c0_8] : memref<8x32xf32, #tpu.memory_space<vmem>>, vector<8x32xf32>
    %cst_9 = arith.constant dense<0.000000e+00> : vector<8x384xf32>
    %21 = tpu.matmul %20, %19, %cst_9 {dimension_numbers = #tpu.dot_dimension_numbers<[1], [0], [0], [1], [0, 0, 1, 1], [], []>} : vector<8x32xf32>, vector<32x384xf32>, vector<8x384xf32> -> vector<8x384xf32>
    %c0_10 = arith.constant 0 : index
    %c0_11 = arith.constant 0 : index
    %22 = vector.load %arg5[%c0_10, %c0_11] : memref<8x1xf32, #tpu.memory_space<vmem>>, vector<8x1xf32>
    %23 = vector.broadcast %22 : vector<8x1xf32> to vector<8x384xf32>
    %24 = arith.addf %21, %23 : vector<8x384xf32>
    %cst_12 = arith.constant 2.000000e-02 : f32
    %25 = vector.broadcast %cst_12 : f32 to vector<8x384xf32>
    %26 = arith.mulf %25, %24 : vector<8x384xf32>
    %27 = arith.maximumf %24, %26 : vector<8x384xf32>
    %c0_13 = arith.constant 0 : index
    %c0_14 = arith.constant 0 : index
    %28 = vector.load %arg6[%c0_13, %c0_14] : memref<8x1xf32, #tpu.memory_space<vmem>>, vector<8x1xf32>
    %29 = vector.broadcast %28 : vector<8x1xf32> to vector<8x384xf32>
    %30 = arith.mulf %27, %29 : vector<8x384xf32>
    %c0_15 = arith.constant 0 : index
    %c0_16 = arith.constant 0 : index
    %31 = vector.load %arg7[%c0_15, %c0_16] : memref<8x1xf32, #tpu.memory_space<vmem>>, vector<8x1xf32>
    %32 = vector.broadcast %31 : vector<8x1xf32> to vector<8x384xf32>
    %33 = arith.addf %30, %32 : vector<8x384xf32>
    %cst_17 = arith.constant dense<0xFF800000> : vector<384xf32>
    %34 = vector.multi_reduction <maximumf>, %33, %cst_17 [0] : vector<8x384xf32> to vector<384xf32>
    %35 = vector.shape_cast %34 : vector<384xf32> to vector<1x384xf32>
    %36 = vector.broadcast %35 : vector<1x384xf32> to vector<8x384xf32>
    %37 = arith.subf %33, %36 : vector<8x384xf32>
    %38 = math.exp %37 : vector<8x384xf32>
    %cst_18 = arith.constant dense<0.000000e+00> : vector<384xf32>
    %39 = vector.multi_reduction <add>, %38, %cst_18 [0] : vector<8x384xf32> to vector<384xf32>
    %40 = vector.shape_cast %39 : vector<384xf32> to vector<1x384xf32>
    %41 = tpu.reciprocal %40 {approx = true} : vector<1x384xf32> -> vector<1x384xf32>
    %42 = arith.mulf %40, %41 : vector<1x384xf32>
    %cst_19 = arith.constant 2.000000e+00 : f32
    %43 = vector.broadcast %cst_19 : f32 to vector<1x384xf32>
    %44 = arith.subf %43, %42 : vector<1x384xf32>
    %45 = arith.mulf %41, %44 : vector<1x384xf32>
    %46 = vector.broadcast %45 : vector<1x384xf32> to vector<8x384xf32>
    %47 = arith.mulf %38, %46 : vector<8x384xf32>
    %c0_20 = arith.constant 0 : index
    %c0_21 = arith.constant 0 : index
    %c0_22 = arith.constant 0 : index
    %48 = vector.load %arg8[%c0_20, %c0_21, %c0_22] : memref<1x8x384xf32, #tpu.memory_space<vmem>>, vector<1x8x384xf32>
    %49 = vector.shape_cast %48 : vector<1x8x384xf32> to vector<8x384xf32>
    %50 = vector.shape_cast %47 : vector<8x384xf32> to vector<1x8x384xf32>
    tpu.vector_store %arg8[%c0_20, %c0_21, %c0_22], %50 {strides = array<i32>} : memref<1x8x384xf32, #tpu.memory_space<vmem>>, vector<1x8x384xf32>,
    return
  }
  func.func @transform_0(%arg0: i32) -> (i32, i32, i32) {
    %c0_i32 = arith.constant 0 : i32
    %c0_i32_0 = arith.constant 0 : i32
    %c0_i32_1 = arith.constant 0 : i32
    return %arg0, %c0_i32, %c0_i32_0 : i32, i32, i32
  }
  func.func @transform_1(%arg0: i32) -> (i32, i32) {
    %c0_i32 = arith.constant 0 : i32
    %c0_i32_0 = arith.constant 0 : i32
    %c0_i32_1 = arith.constant 0 : i32
    return %c0_i32, %c0_i32_0 : i32, i32
  }
  func.func @transform_2(%arg0: i32) -> (i32, i32) {
    %c0_i32 = arith.constant 0 : i32
    %c0_i32_0 = arith.constant 0 : i32
    %c0_i32_1 = arith.constant 0 : i32
    return %c0_i32, %c0_i32_0 : i32, i32
  }
  func.func @transform_3(%arg0: i32) -> (i32, i32) {
    %c0_i32 = arith.constant 0 : i32
    %c0_i32_0 = arith.constant 0 : i32
    %c0_i32_1 = arith.constant 0 : i32
    return %c0_i32, %c0_i32_0 : i32, i32
  }
  func.func @transform_4(%arg0: i32) -> (i32, i32) {
    %c0_i32 = arith.constant 0 : i32
    %c0_i32_0 = arith.constant 0 : i32
    %c0_i32_1 = arith.constant 0 : i32
    return %c0_i32, %c0_i32_0 : i32, i32
  }
  func.func @transform_5(%arg0: i32) -> (i32, i32) {
    %c0_i32 = arith.constant 0 : i32
    %c0_i32_0 = arith.constant 0 : i32
    %c0_i32_1 = arith.constant 0 : i32
    return %c0_i32, %c0_i32_0 : i32, i32
  }
  func.func @transform_6(%arg0: i32) -> (i32, i32) {
    %c0_i32 = arith.constant 0 : i32
    %c0_i32_0 = arith.constant 0 : i32
    %c0_i32_1 = arith.constant 0 : i32
    return %c0_i32, %c0_i32_0 : i32, i32
  }
  func.func @transform_7(%arg0: i32) -> (i32, i32, i32) {
    %c0_i32 = arith.constant 0 : i32
    %c0_i32_0 = arith.constant 0 : i32
    %c0_i32_1 = arith.constant 0 : i32
    return %arg0, %c0_i32, %c0_i32_0 : i32, i32, i32
  }
}

</mosaic_0001>

<bundles_post_ra>
// kernel: _encoder_apply.1
= control target key start
LH: loop header
LB: loop body
LE: loop exit
PB: predicated region body
PF: predicated region fallthrough
CT: control target
= control target key end

     0   :  { %s968_s24 = smov 0   ;;  %s1105_s0 = inlined_call_operand.vmem [shape: f32[2,8,512], index: 0, kind: input, shape index: {}]   ;;  %s1106_s1 = inlined_call_operand.vmem [shape: f32[32,72], index: 1, kind: input, shape index: {}]   ;;  %s1107_s2 = inlined_call_operand.vmem [shape: f32[32,1], index: 2, kind: input, shape index: {}]   ;;  %s1108_s3 = inlined_call_operand.vmem [shape: f32[8,32], index: 3, kind: input, shape index: {}]   ;;  %s1109_s4 = inlined_call_operand.vmem [shape: f32[8,1], index: 4, kind: input, shape index: {}]   ;;  %s1110_s5 = inlined_call_operand.vmem [shape: f32[8,1], index: 5, kind: input, shape index: {}]   ;;  %s1111_s6 = inlined_call_operand.vmem [shape: f32[8,1], index: 6, kind: input, shape index: {}]   ;;  %s1112_s7 = inlined_call_operand.vmem [shape: f32[2,8,384], index: 7, kind: output, shape index: {}]  }
   0x1 LB: > { %s772_s25 = sadd.s32 4294967295, %s917_s24   ;;  %p776_p0 = scmp.ge.s32.totalorder %s917_s24, 1  ;;  %s917_s24 = sphi %s968_s24, %s17_s24  }
   0x2   : > { %p237_p1 = scmp.lt.s32.totalorder %s917_s24, 3 }
   0x4   : > { %p238_p2 = pnand %p776_p0, %p237_p1 }
   0x5   : > { %p269_p3 = scmp.lt.s32.totalorder (!%p238_p2), %s772_s25, 1  ;;  %s919_s30 = smov (!%p238_p2), 92  }
   0x6   : > { %241 = sbr.rel (%p238_p2) target bundleno = 542 (0x21e), region = 48  ;;  %s920_s8 = smov (!%p238_p2), 90  }
   0x7   : > { %s921_s9 = smov (!%p238_p2), 109   ;;  %s922_s10 = smov (!%p238_p2), 108  }
   0x8   : > { %s923_s11 = smov (!%p238_p2), 91   ;;  %s924_s12 = smov (!%p238_p2), 110  }
   0x9   : > { %s925_s13 = smov (!%p238_p2), 126   ;;  %s926_s14 = smov (!%p238_p2), 127  }
   0xb   : > { %s1114_s25 = smov (!%p269_p3, %s772_s25), 1  ;;  %vm400_vm0 = vcmask 736256   ;;  %vm385_vm1 = vcmask 744448   ;;  %v927_v21 = vmov 0   ;;  %v414_v22 = vld [vmem:[%s1107_s2 + $0x18] sm:$0xff]  ;;  %vm370_vm2 = vcmask 752640  }
   0xc   : > { %s797_s26 = sshll.u32 %s1114_s25, 5  ;;  %896 = vset.pattern.permute.xlu1 %v927_v21  ;;  %898 = vset.pattern.permute.xlu0 %v927_v21  ;;  %vm355_vm3 = vcmask 883712   ;;  %vm340_vm4 = vcmask 891904   ;;  %vm325_vm5 = vcmask 900096   ;;  %vm310_vm6 = vcmask 1031168   ;;  %v411_v38 = vld [vmem:[%s1107_s2] sm:$0xff] }
   0xd   : > { %s273_s29 = scalar_lea.vmem %s1105_s0, %s797_s26  ;;  %897 = vset.pattern.permute.xlu2 %v927_v21  ;;  %vm295_vm7 = vcmask 1039360   ;;  %v412_v52 = vld [vmem:[%s1107_s2 + $0x8] sm:$0xff]  ;;  %v407_v60 = vld [vmem:[%s1106_s1] sm:$0xff]  ;;  %vm435_vm8 = vcmask 588800   ;;  %vm566_vm9 = vcmask 261120   ;;  %s798_s18 = smul.u32 24, %s1114_s25 }
   0xe   : > { %v982_v0 = vld [vmem:[%s273_s29] sm:$0xff]  ;;  %v984_v1 = vld [vmem:[%s273_s29 + $0x8] sm:$0xff]  ;;  %v988_v3 = vld [vmem:[%s273_s29 + $0x10] sm:$0xff] }
   0xf   : > { %v826_v2 = vpack.i.bf16 %v984_v1, %v982_v0  ;;  %v282_v4 = vld [vmem:[%s273_s29 + $0x18] sm:$0xff]  ;;  %s278_s21 = scalar_lea.vmem %s1112_s7, %s798_s18 }
  0x10   : > { %v841_v5 = vpack.i.bf16 %v282_v4, %v988_v3 }
  0x11   : > { %827 = vrot.lane.b32.xlu1 %v826_v2, %s919_s30  ;;  %817 = vrot.lane.b32.xlu0 %v826_v2, %s920_s8 }
  0x12   : > { %837 = vrot.lane.b32.xlu2 %v826_v2, %s921_s9 }
  0x19   : > { %832 = vrot.lane.b32.xlu1 %v826_v2, %s922_s10  ;;  %822 = vrot.lane.b32.xlu0 %v826_v2, %s923_s11 }
  0x1a   : > { %842 = vrot.lane.b32.xlu2 %v841_v5, %s920_s8 }
  0x21   : > { %852 = vrot.lane.b32.xlu1 %v841_v5, %s923_s11  ;;  %847 = vrot.lane.b32.xlu0 %v826_v2, %s924_s12 }
  0x22   : > { %857 = vrot.lane.b32.xlu2 %v826_v2, %s925_s13 }
  0x29   : > { %867 = vrot.lane.b32.xlu1 %v826_v2, %s926_s14  ;;  %862 = vrot.lane.b32.xlu0 %v841_v5, %s919_s30 }
  0x2a   : > { %872 = vrot.lane.b32.xlu2 %v841_v5, %s922_s10 }
  0x31   : > { %882 = vrot.lane.b32.xlu1 %v841_v5, %s924_s12  ;;  %877 = vrot.lane.b32.xlu0 %v841_v5, %s921_s9 }
  0x32   : > { %887 = vrot.lane.b32.xlu2 %v841_v5, %s925_s13 }
  0x39   : > { %892 = vrot.lane.b32.xlu0 %v841_v5, %s926_s14  ;;  %432 = vperm.xlu1 %896, %v414_v22  }
  0x41   : > { %417 = vperm.xlu1 %896, %v411_v38   ;;  %422 = vperm.xlu0 %898, %v412_v52  }
  0x6c   : > { %v991_v6 = vpop.permute.xlu2 %837 }
  0x6d   : > { %v840_v29 = vunpack.i.h.bf16 %v991_v6  ;;  %v839_v30 = vunpack.i.l.bf16 %v991_v6 }
  0x6f   : > { %v341_v37 = vsel %vm340_vm4, %v839_v30, %v840_v29 }
  0x74   : > { %v843_v7 = vpop.permute.xlu2 %842 }
  0x75   : > { %v845_v8 = vunpack.i.h.bf16 %v843_v7  ;;  %v844_v9 = vunpack.i.l.bf16 %v843_v7 }
  0x77   : > { %v403_v10 = vsel %vm400_vm0, %v844_v9, %v845_v8 }
  0x78   : > { %513 = vmatpush.msra.mxu2 %v403_v10 }
  0x7c   : > { %v1004_v27 = vpop.permute.xlu2 %857 }
  0x7d   : > { %v860_v33 = vunpack.i.h.bf16 %v1004_v27  ;;  %v859_v34 = vunpack.i.l.bf16 %v1004_v27 }
  0x7f   : > { %v311_v46 = vsel %vm310_vm6, %v859_v34, %v860_v33 }
  0x83   : > { %v993_v11 = vpop.permute.xlu1 %827  ;;  %v818_v12 = vpop.permute.xlu0 %817 }
  0x84   : > { %v820_v13 = vunpack.i.h.bf16 %v818_v12  ;;  %v819_v14 = vunpack.i.l.bf16 %v818_v12  ;;  %v830_v17 = vunpack.i.h.bf16 %v993_v11  ;;  %v829_v18 = vunpack.i.l.bf16 %v993_v11  ;;  %v873_v47 = vpop.permute.xlu2 %872 }
  0x85   : > { %v875_v48 = vunpack.i.h.bf16 %v873_v47  ;;  %v874_v49 = vunpack.i.l.bf16 %v873_v47 }
  0x86   : > { %v401_v15 = vsel %vm400_vm0, %v819_v14, %v820_v13  ;;  %v402_v16 = vsel %vm400_vm0, %v820_v13, %v844_v9  ;;  %v371_v31 = vsel %vm370_vm2, %v829_v18, %v830_v17  ;;  %v408_v14 = vld [vmem:[%s1106_s1 + $0x8] sm:$0xff]  ;;  %v636_v18 = vld [vmem:[%s1110_s5] sm:$0xff] }
  0x87   : > { %455 = vmatpush.msra.mxu0 %v401_v15  ;;  %484 = vmatpush.msra.mxu1 %v402_v16  ;;  %v358_v61 = vsel %vm355_vm3, %v874_v49, %v875_v48 }
  0x88   : > { %639 = vperm.xlu1 %896, %v636_v18  }
  0x8b   : > { %v997_v19 = vpop.permute.xlu1 %832  ;;  %v823_v20 = vpop.permute.xlu0 %822 }
  0x8c   : > { %v835_v23 = vunpack.i.h.bf16 %v997_v19  ;;  %v834_v24 = vunpack.i.l.bf16 %v997_v19  ;;  %v825_v25 = vunpack.i.h.bf16 %v823_v20  ;;  %v824_v26 = vunpack.i.l.bf16 %v823_v20  ;;  %v888_v63 = vpop.permute.xlu2 %887  ;;  %v413_v19 = vld [vmem:[%s1107_s2 + $0x10] sm:$0xff] }
  0x8d   : > { %v890_v2 = vunpack.i.h.bf16 %v888_v63  ;;  %v889_v11 = vunpack.i.l.bf16 %v888_v63  ;;  %427 = vperm.xlu2 %897, %v413_v19  }
  0x8e   : > { %v386_v28 = vsel %vm385_vm1, %v824_v26, %v825_v25  ;;  %v356_v32 = vsel %vm355_vm3, %v834_v24, %v835_v23  ;;  %v357_v62 = vsel %vm355_vm3, %v835_v23, %v874_v49  ;;  %v409_v24 = vld [vmem:[%s1106_s1 + $0x10] sm:$0xff]  ;;  %v410_v26 = vld [vmem:[%s1106_s1 + $0x18] sm:$0xff] }
  0x8f   : > { %456 = vmatpush.msra.mxu0 %v386_v28  ;;  %v313_v16 = vsel %vm310_vm6, %v889_v11, %v890_v2  ;;  %v312_v6 = vsel %vm310_vm6, %v860_v33, %v889_v11 }
  0x91   : > { %457 = vmatpush.msra.mxu0 %v371_v31 }
  0x93   : > { %v853_v35 = vpop.permute.xlu1 %852  ;;  %v1015_v36 = vpop.permute.xlu0 %847  ;;  %458 = vmatpush.msra.mxu0 %v356_v32 }
  0x94   : > { %v855_v39 = vunpack.i.h.bf16 %v853_v35  ;;  %v854_v40 = vunpack.i.l.bf16 %v853_v35  ;;  %v850_v41 = vunpack.i.h.bf16 %v1015_v36  ;;  %v849_v42 = vunpack.i.l.bf16 %v1015_v36 }
  0x95   : > { %459 = vmatpush.msra.mxu0 %v341_v37 }
  0x96   : > { %v326_v43 = vsel %vm325_vm5, %v849_v42, %v850_v41  ;;  %v387_v44 = vsel %vm385_vm1, %v825_v25, %v854_v40  ;;  %v388_v45 = vsel %vm385_vm1, %v854_v40, %v855_v39  ;;  %v560_v25 = vld [vmem:[%s1109_s4] sm:$0xff] }
  0x97   : > { %460 = vmatpush.msra.mxu0 %v326_v43  ;;  %485 = vmatpush.msra.mxu1 %v387_v44 }
  0x98   : > { %514 = vmatpush.msra.mxu2 %v388_v45  ;;  %563 = vperm.xlu2 %897, %v560_v25  }
  0x99   : > { %461 = vmatpush.msra.mxu0 %v311_v46 }
  0x9b   : > { %v868_v50 = vpop.permute.xlu1 %867  ;;  %v863_v51 = vpop.permute.xlu0 %862 }
  0x9c   : > { %v870_v53 = vunpack.i.h.bf16 %v868_v50  ;;  %v869_v54 = vunpack.i.l.bf16 %v868_v50  ;;  %v865_v55 = vunpack.i.h.bf16 %v863_v51  ;;  %v864_v56 = vunpack.i.l.bf16 %v863_v51  ;;  %v559_v51 = vld [vmem:[%s1108_s3] sm:$0xff] }
  0x9e   : > { %v296_v57 = vsel %vm295_vm7, %v869_v54, %v870_v53  ;;  %v372_v58 = vsel %vm370_vm2, %v830_v17, %v864_v56  ;;  %v373_v59 = vsel %vm370_vm2, %v864_v56, %v865_v55 }
  0x9f   : > { %462 = vmatpush.msra.mxu0 %v296_v57  ;;  %486 = vmatpush.msra.mxu1 %v372_v58 }
  0xa0   : > { %515 = vmatpush.msra.mxu2 %v373_v59 }
  0xa1   : > { %463 = vmatpush.msra.mxu0 %v982_v0  ;;  %487 = vmatpush.msra.mxu1 %v357_v62 }
  0xa2   : > { %780 = vmatmul.msk.f32.vlgmr.msra.gmra.mxu0 %vm435_vm8, %v407_v60  ;;  %516 = vmatpush.msra.mxu2 %v358_v61 }
  0xa3   : > { %v883_v4 = vpop.permute.xlu1 %882  ;;  %v878_v5 = vpop.permute.xlu0 %877 }
  0xa4   : > { %v885_v7 = vunpack.i.h.bf16 %v883_v4  ;;  %v884_v8 = vunpack.i.l.bf16 %v883_v4  ;;  %v880_v9 = vunpack.i.h.bf16 %v878_v5  ;;  %v879_v10 = vunpack.i.l.bf16 %v878_v5 }
  0xa6   : > { %v342_v12 = vsel %vm340_vm4, %v840_v29, %v879_v10  ;;  %v343_v13 = vsel %vm340_vm4, %v879_v10, %v880_v9  ;;  %v328_v0 = vsel %vm325_vm5, %v884_v8, %v885_v7  ;;  %v327_v15 = vsel %vm325_vm5, %v850_v41, %v884_v8 }
  0xa7   : > { %488 = vmatpush.msra.mxu1 %v342_v12  ;;  %517 = vmatpush.msra.mxu2 %v343_v13 }
  0xa9   : > { %489 = vmatpush.msra.mxu1 %v327_v15  ;;  %518 = vmatpush.msra.mxu2 %v328_v0 }
  0xaa   : > { %781 = vmatmul.msk.f32.gmra.mxu0 %vm435_vm8, %v408_v14 }
  0xab   : > { %v893_v17 = vpop.permute.xlu0 %892  ;;  %490 = vmatpush.msra.mxu1 %v312_v6  ;;  %519 = vmatpush.msra.mxu2 %v313_v16  ;;  %v433_v28 = vpop.permute.xlu1 %432 }
  0xac   : > { %v895_v20 = vunpack.i.h.bf16 %v893_v17  ;;  %v894_v21 = vunpack.i.l.bf16 %v893_v17 }
  0xae   : > { %v297_v22 = vsel %vm295_vm7, %v870_v53, %v894_v21  ;;  %v298_v23 = vsel %vm295_vm7, %v894_v21, %v895_v20 }
  0xaf   : > { %491 = vmatpush.msra.mxu1 %v297_v22  ;;  %520 = vmatpush.msra.mxu2 %v298_v23 }
  0xb1   : > { %492 = vmatpush.msra.mxu1 %v984_v1  ;;  %521 = vmatpush.msra.mxu2 %v988_v3  ;;  %v645_v1 = vld [vmem:[%s1111_s6] sm:$0xff] }
  0xb2   : > { %782 = vmatmul.msk.f32.gmra.mxu0 %vm435_vm8, %v409_v24  ;;  %784 = vmatmul.msk.f32.vlgmr.msra.gmra.mxu1 %vm435_vm8, %v407_v60 }
  0xb3   : > { %788 = vmatmul.msk.f32.vlgmr.msra.gmra.mxu2 %vm435_vm8, %v407_v60  ;;  %648 = vperm.xlu2 %897, %v645_v1   ;;  %v423_v31 = vpop.permute.xlu0 %422  ;;  %v418_v33 = vpop.permute.xlu1 %417 }
  0xba   : > { %783 = vmatmul.msk.f32.gmra.mxu0 %vm435_vm8, %v410_v26  ;;  %785 = vmatmul.msk.f32.gmra.mxu1 %vm435_vm8, %v408_v14 }
  0xbb   : > { %789 = vmatmul.msk.f32.gmra.mxu2 %vm435_vm8, %v408_v14 }
  0xc2   : > { %786 = vmatmul.msk.f32.gmra.mxu1 %vm435_vm8, %v409_v24 }
  0xc3   : > { %790 = vmatmul.msk.f32.gmra.mxu2 %vm435_vm8, %v409_v24 }
  0xca   : > { %787 = vmatmul.msk.f32.gmra.mxu1 %vm435_vm8, %v410_v26 }
  0xcb   : > { %791 = vmatmul.msk.f32.gmra.mxu2 %vm435_vm8, %v410_v26 }
  0xe7   : > { %v428_v32 = vpop.permute.xlu2 %427 }
  0xf2   : > { %v564_v17 = vpop.permute.xlu2 %563 }
  0xfa   : > { %v640_v22 = vpop.permute.xlu1 %639 }
 0x10d   : > { %v649_v24 = vpop.permute.xlu2 %648 }
 0x11f   : > { %v465_v3 = vpop.f32.mrf.mxu0 }
 0x120   : > { %v466_v42 = vadd.f32 %v465_v3, %v418_v33 }
 0x122   : > { %v535_v47 = vmul.f32 0.02, %v466_v42 }
 0x124   : > { %v547_v50 = vmax.f32 %v466_v42, %v535_v47 }
 0x127   : > { %v468_v27 = vpop.f32.mrf.mxu0 }
 0x128   : > { %v469_v38 = vadd.f32 %v468_v27, %v423_v31 }
 0x12a   : > { %v538_v44 = vmul.f32 0.02, %v469_v38 }
 0x12c   : > { %v550_v49 = vmax.f32 %v469_v38, %v538_v44 }
 0x12f   : > { %v471_v29 = vpop.f32.mrf.mxu0  ;;  %v494_v30 = vpop.f32.mrf.mxu1 }
 0x130   : > { %v472_v35 = vadd.f32 %v471_v29, %v428_v32  ;;  %v495_v57 = vadd.f32 %v494_v30, %v418_v33 }
 0x132   : > { %v541_v41 = vmul.f32 0.02, %v472_v35  ;;  %v536_v62 = vmul.f32 0.02, %v495_v57 }
 0x134   : > { %v553_v46 = vmax.f32 %v472_v35, %v541_v41  ;;  %v548_v12 = vmax.f32 %v495_v57, %v536_v62 }
 0x136   : > { %v523_v34 = vpop.f32.mrf.mxu2 }
 0x137   : > { %v474_v36 = vpop.f32.mrf.mxu0  ;;  %v497_v37 = vpop.f32.mrf.mxu1  ;;  %v524_v10 = vadd.f32 %v523_v34, %v418_v33 }
 0x138   : > { %v475_v39 = vadd.f32 %v474_v36, %v433_v28  ;;  %v498_v55 = vadd.f32 %v497_v37, %v423_v31 }
 0x139   : > { %v537_v14 = vmul.f32 0.02, %v524_v10 }
 0x13a   : > { %v544_v40 = vmul.f32 0.02, %v475_v39  ;;  %v539_v60 = vmul.f32 0.02, %v498_v55 }
 0x13b   : > { %v549_v6 = vmax.f32 %v524_v10, %v537_v14 }
 0x13c   : > { %v556_v43 = vmax.f32 %v475_v39, %v544_v40  ;;  %v551_v8 = vmax.f32 %v498_v55, %v539_v60 }
 0x13e   : > { %v526_v45 = vpop.f32.mrf.mxu2  ;;  %582 = vmatpush.msra.mxu3 %v556_v43 }
 0x13f   : > { %v500_v48 = vpop.f32.mrf.mxu1  ;;  %v527_v7 = vadd.f32 %v526_v45, %v423_v31 }
 0x140   : > { %583 = vmatpush.msra.mxu3 %v553_v46  ;;  %v501_v52 = vadd.f32 %v500_v48, %v428_v32 }
 0x141   : > { %v540_v0 = vmul.f32 0.02, %v527_v7 }
 0x142   : > { %584 = vmatpush.msra.mxu3 %v550_v49  ;;  %v542_v58 = vmul.f32 0.02, %v501_v52 }
 0x143   : > { %v552_v16 = vmax.f32 %v527_v7, %v540_v0 }
 0x144   : > { %585 = vmatpush.msra.mxu3 %v547_v50  ;;  %v554_v4 = vmax.f32 %v501_v52, %v542_v58 }
 0x145   : > { %792 = vmatmul.msk.f32.vlgmr.msra.gmra.mxu3 %vm566_vm9, %v559_v51 }
 0x146   : > { %v529_v53 = vpop.f32.mrf.mxu2 }
 0x147   : > { %v503_v54 = vpop.f32.mrf.mxu1  ;;  %v530_v63 = vadd.f32 %v529_v53, %v428_v32 }
 0x148   : > { %v504_v56 = vadd.f32 %v503_v54, %v433_v28 }
 0x149   : > { %v543_v11 = vmul.f32 0.02, %v530_v63 }
 0x14a   : > { %v545_v59 = vmul.f32 0.02, %v504_v56 }
 0x14b   : > { %v555_v15 = vmax.f32 %v530_v63, %v543_v11 }
 0x14c   : > { %v557_v61 = vmax.f32 %v504_v56, %v545_v59 }
 0x14e   : > { %v532_v2 = vpop.f32.mrf.mxu2  ;;  %602 = vmatpush.msrb.mxu3 %v557_v61 }
 0x14f   : > { %v533_v5 = vadd.f32 %v532_v2, %v433_v28 }
 0x150   : > { %603 = vmatpush.msrb.mxu3 %v554_v4 }
 0x151   : > { %v546_v9 = vmul.f32 0.02, %v533_v5 }
 0x152   : > { %604 = vmatpush.msrb.mxu3 %v551_v8 }
 0x153   : > { %v558_v13 = vmax.f32 %v533_v5, %v546_v9 }
 0x154   : > { %605 = vmatpush.msrb.mxu3 %v548_v12 }
 0x155   : > { %793 = vmatmul.msk.f32.vlgmr.msrb.gmra.mxu3 %vm566_vm9, %v559_v51 }
 0x156   : > { %622 = vmatpush.msra.mxu3 %v558_v13 }
 0x158   : > { %623 = vmatpush.msra.mxu3 %v555_v15 }
 0x15a   : > { %624 = vmatpush.msra.mxu3 %v552_v16 }
 0x15c   : > { %625 = vmatpush.msra.mxu3 %v549_v6 }
 0x15d   : > { %794 = vmatmul.msk.f32.vlgmr.msra.gmra.mxu3 %vm566_vm9, %v559_v51 }
 0x1c8   : > { %v587_v18 = vpop.f32.mrf.mxu3 }
 0x1c9   : > { %v588_v19 = vadd.f32 %v587_v18, %v564_v17 }
 0x1cb   : > { %v630_v20 = vmul.f32 0.02, %v588_v19 }
 0x1cd   : > { %v633_v21 = vmax.f32 %v588_v19, %v630_v20 }
 0x1cf   : > { %v642_v23 = vmul.f32 %v640_v22, %v633_v21 }
 0x1d1   : > { %v651_v25 = vadd.f32 %v649_v24, %v642_v23 }
 0x1d3   : > { %v654_v26 = vrot.slane %v651_v25, 4 }
 0x1d5   : > { %v655_v1 = vmax.f32 %v651_v25, %v654_v26 }
 0x1d7   : > { %v656_v3 = vrot.slane %v655_v1, 2 }
 0x1d8   : > { %v607_v27 = vpop.f32.mrf.mxu3 }
 0x1d9   : > { %v657_v28 = vmax.f32 %v655_v1, %v656_v3  ;;  %v608_v29 = vadd.f32 %v607_v27, %v564_v17 }
 0x1db   : > { %v658_v30 = vrot.slane %v657_v28, 1  ;;  %v631_v31 = vmul.f32 0.02, %v608_v29 }
 0x1dd   : > { %v659_v32 = vmax.f32 %v657_v28, %v658_v30  ;;  %v634_v33 = vmax.f32 %v608_v29, %v631_v31 }
 0x1df   : > { %v672_v34 = vsub.f32 %v651_v25, %v659_v32  ;;  %v643_v35 = vmul.f32 %v640_v22, %v634_v33 }
 0x1e0   : > { %v627_v36 = vpop.f32.mrf.mxu3 }
 0x1e1   : > { %v675_v37 = vmul.f32 1.442695, %v672_v34  ;;  %v652_v38 = vadd.f32 %v649_v24, %v643_v35  ;;  %v628_v39 = vadd.f32 %v627_v36, %v564_v17 }
 0x1e3   : > { %899 = vpow2.f32 %v675_v37  ;;  %v660_v40 = vrot.slane %v652_v38, 4  ;;  %v632_v41 = vmul.f32 0.02, %v628_v39 }
 0x1e5   : > { %v661_v42 = vmax.f32 %v652_v38, %v660_v40  ;;  %v635_v43 = vmax.f32 %v628_v39, %v632_v41 }
 0x1e7   : > { %v662_v44 = vrot.slane %v661_v42, 2  ;;  %v644_v45 = vmul.f32 %v640_v22, %v635_v43 }
 0x1e9   : > { %v900_v46 = vpop.eup %899  ;;  %v663_v47 = vmax.f32 %v661_v42, %v662_v44  ;;  %v653_v48 = vadd.f32 %v649_v24, %v644_v45 }
 0x1ea   : > { %v681_v49 = vrot.slane %v900_v46, 4 }
 0x1eb   : > { %v664_v50 = vrot.slane %v663_v47, 1  ;;  %v666_v51 = vrot.slane %v653_v48, 4 }
 0x1ec   : > { %v682_v52 = vadd.f32 %v900_v46, %v681_v49 }
 0x1ed   : > { %v665_v53 = vmax.f32 %v663_v47, %v664_v50  ;;  %v667_v54 = vmax.f32 %v653_v48, %v666_v51 }
 0x1ee   : > { %v683_v55 = vrot.slane %v682_v52, 2 }
 0x1ef   : > { %v673_v56 = vsub.f32 %v652_v38, %v665_v53  ;;  %v668_v57 = vrot.slane %v667_v54, 2 }
 0x1f0   : > { %v684_v58 = vadd.f32 %v683_v55, %v682_v52 }
 0x1f1   : > { %v677_v59 = vmul.f32 1.442695, %v673_v56  ;;  %v669_v60 = vmax.f32 %v667_v54, %v668_v57 }
 0x1f2   : > { %v685_v61 = vrot.slane %v684_v58, 1 }
 0x1f3   : > { %901 = vpow2.f32 %v677_v59  ;;  %v670_v62 = vrot.slane %v669_v60, 1 }
 0x1f4   : > { %v686_v63 = vadd.f32 %v685_v61, %v684_v58 }
 0x1f5   : > { %v671_v2 = vmax.f32 %v669_v60, %v670_v62 }
 0x1f6   : > { %903 = vrcp.f32 %v686_v63 }
 0x1f7   : > { %v674_v4 = vsub.f32 %v653_v48, %v671_v2 }
 0x1f9   : > { %v902_v5 = vpop.eup %901  ;;  %v679_v7 = vmul.f32 1.442695, %v674_v4 }
 0x1fa   : > { %v687_v8 = vrot.slane %v902_v5, 4 }
 0x1fb   : > { %905 = vpow2.f32 %v679_v7 }
 0x1fc   : > { %v904_v9 = vpop.eup %903  ;;  %v688_v10 = vadd.f32 %v902_v5, %v687_v8 }
 0x1fd   : > { %v702_v11 = vmul.f32 %v904_v9, %v686_v63 }
 0x1fe   : > { %v689_v12 = vrot.slane %v688_v10, 2 }
 0x1ff   : > { %v705_v13 = vsub.f32 2.0, %v702_v11 }
 0x200   : > { %v690_v0 = vadd.f32 %v689_v12, %v688_v10 }
 0x201   : > { %v906_v14 = vpop.eup %905  ;;  %v708_v15 = vmul.f32 %v904_v9, %v705_v13 }
 0x202   : > { %v691_v16 = vrot.slane %v690_v0, 1  ;;  %v693_v6 = vrot.slane %v906_v14, 4 }
 0x203   : > { %v711_v17 = vmul.f32 %v900_v46, %v708_v15 }
 0x204   : > { %v692_v18 = vadd.f32 %v691_v16, %v690_v0  ;;  %v694_v19 = vadd.f32 %v906_v14, %v693_v6 }
 0x205   : > { %714 = vst [vmem:[%s278_s21] sm:$0xff] %v711_v17 }
 0x206   : > { %907 = vrcp.f32 %v692_v18  ;;  %v695_v20 = vrot.slane %v694_v19, 2 }
 0x208   : > { %v696_v21 = vadd.f32 %v695_v20, %v694_v19 }
 0x20a   : > { %v697_v22 = vrot.slane %v696_v21, 1 }
 0x20c   : > { %v908_v23 = vpop.eup %907  ;;  %v698_v24 = vadd.f32 %v697_v22, %v696_v21 }
 0x20d   : > { %v703_v25 = vmul.f32 %v908_v23, %v692_v18 }
 0x20e   : > { %909 = vrcp.f32 %v698_v24 }
 0x20f   : > { %v706_v26 = vsub.f32 2.0, %v703_v25 }
 0x211   : > { %v709_v1 = vmul.f32 %v908_v23, %v706_v26 }
 0x213   : > { %v712_v3 = vmul.f32 %v902_v5, %v709_v1 }
 0x214   : > { %v910_v27 = vpop.eup %909 }
 0x215   : > { %715 = vst [vmem:[%s278_s21 + $0x8] sm:$0xff] %v712_v3  ;;  %v704_v28 = vmul.f32 %v910_v27, %v698_v24 }
 0x217   : > { %v707_v29 = vsub.f32 2.0, %v704_v28 }
 0x219   : > { %v710_v30 = vmul.f32 %v910_v27, %v707_v29 }
 0x21b   : > { %v713_v31 = vmul.f32 %v906_v14, %v710_v30 }
 0x21d   : > { %716 = vst [vmem:[%s278_s21 + $0x10] sm:$0xff] %v713_v31 }
 0x21e PF: > { %s17_s24 = sadd.s32 1, %s917_s24  }
 0x21f   : > { %p14_p4 = scmp.ge.s32.totalorder %s17_s24, 4  }
 0x221   :  { %16 = sbr.rel (!%p14_p4) target bundleno = 1 (0x1), region = 78 }

</bundles_post_ra>
